<compile_context>
chip_gen: v6e
topology: v6e:2x2x1
jax: 0.10.0
libtpu: 0.0.40
codegen_flags: <defaults>
</compile_context>

<pallas_src>
import math

import jax
import jax.numpy as jnp
from jax import lax
from jax.experimental import pallas as pl
from jax.experimental.pallas import tpu as pltpu


def rga_kernel(src_ref, attn_ref, w1_ref, s1_ref, w2_ref, s2_ref, o_ref):
    # src_ref : (N, D, L)   residual input / bmm lhs
    # attn_ref: (N, L, L)   graph attention matrix (bmm rhs)
    # w*_ref  : (D, K*D)    im2col conv weight with eval-BN scale folded in
    # s*_ref  : (D, 1)      folded shift = beta + (bias - running_mean) * scale
    # o_ref   : (N, D, L)
    N, D, L = src_ref.shape
    KD = w1_ref.shape[1]
    K = KD // D
    pad = (K - 1) // 2

    src = src_ref[...].astype(jnp.float32)

    # Graph mixing: z[n] = src[n] @ attn[n]   (one batched MXU matmul, f32 acc).
    z = jnp.einsum("ndl,nlm->ndm", src, attn_ref[...].astype(jnp.float32),
                   preferred_element_type=jnp.float32)

    def conv_bn_relu(x, w_ref, s_ref):
        # 'same' zero-padding along the length (lane) axis.
        zpad = jnp.zeros((N, D, pad), jnp.float32)
        xp = jnp.concatenate([zpad, x, zpad], axis=-1)        # (N, D, L + 2*pad)
        # im2col patches: patches[n, t*D + ci, l] = xp[n, ci, l + t]
        patches = jnp.concatenate(
            [xp[:, :, t:t + L] for t in range(K)], axis=1)    # (N, K*D, L)
        # Single batched matmul per conv layer (weight broadcast over batch).
        w = jnp.broadcast_to(w_ref[...], (N, D, KD))
        y = jnp.einsum("nok,nkl->nol", w, patches,
                       preferred_element_type=jnp.float32)    # (N, D, L)
        # Fused eval-BN shift + ReLU (Dropout is identity in eval mode).
        return jnp.maximum(y + s_ref[...], 0.0)

    h = conv_bn_relu(z, w1_ref, s1_ref)
    h = conv_bn_relu(h, w2_ref, s2_ref)

    # Residual add + final ReLU.
    o_ref[...] = jnp.maximum(src + h, 0.0).astype(o_ref.dtype)


def _fold_conv_bn(weight, bias, gamma, beta, running_mean, running_var, eps):
    """Fold eval-mode BatchNorm into the conv. Returns (im2col weight, shift)."""
    d_out, d_in, k = weight.shape
    scale = gamma / jnp.sqrt(running_var + eps)                   # (d_out,)
    w = weight.astype(jnp.float32) * scale[:, None, None]         # scale folded
    # im2col layout: w2d[co, t*d_in + ci] = w[co, ci, t]
    w2d = jnp.transpose(w, (0, 2, 1)).reshape(d_out, k * d_in)
    shift = beta + (bias - running_mean) * scale                  # (d_out,)
    return w2d.astype(jnp.float32), shift.reshape(d_out, 1).astype(jnp.float32)


def residual_graph_attention(src, attn, conv1_params, conv2_params, eps=1e-5):
    """src: (N, D, L); attn: (N, L, L);
    conv*_params = (weight (D, D, K), bias, gamma, beta, running_mean, running_var).
    Returns relu(src + conv2(conv1(bmm(src, attn)))) of shape (N, D, L)."""
    N, D, L = src.shape
    K = conv1_params[0].shape[2]
    if K % 2 != 1:
        raise ValueError("kernel_size must be odd for a same-length residual add")

    w1, s1 = _fold_conv_bn(*conv1_params, eps)
    w2, s2 = _fold_conv_bn(*conv2_params, eps)

    vmem = pltpu.MemorySpace.VMEM
    return pl.pallas_call(
        rga_kernel,
        out_shape=jax.ShapeDtypeStruct((N, D, L), src.dtype),
        in_specs=[pl.BlockSpec(memory_space=vmem) for _ in range(6)],
        out_specs=pl.BlockSpec(memory_space=vmem),
    )(src, attn, w1, s1, w2, s2)


def _reference(src, attn, conv1_params, conv2_params, eps=1e-5):
    """Pure-JAX reference mirroring torch eval-mode ResidualGraphAttention."""
    def conv_bn_relu(x, weight, bias, gamma, beta, mean, var):
        k = weight.shape[2]
        y = lax.conv_general_dilated(
            x, weight, window_strides=(1,), padding=[(k // 2, k // 2)],
            dimension_numbers=("NCW", "OIW", "NCW"))
        y = y + bias[None, :, None]
        y = (y - mean[None, :, None]) / jnp.sqrt(var[None, :, None] + eps)
        y = y * gamma[None, :, None] + beta[None, :, None]
        return jnp.maximum(y, 0.0)

    z = jnp.einsum("ndl,nlm->ndm", src, attn)   # torch.bmm
    h = conv_bn_relu(z, *conv1_params)
    h = conv_bn_relu(h, *conv2_params)
    return jnp.maximum(src + h, 0.0)


if __name__ == "__main__":
    # Small shapes implied by the module: batch=2, d_model=8, seq L=16, k=3.
    N, D, L, K = 2, 8, 16, 3

    key = jax.random.PRNGKey(0)
    k_src, k_attn, k1, k2 = jax.random.split(key, 4)

    src = jax.random.normal(k_src, (N, D, L), jnp.float32)
    attn = jax.nn.softmax(
        jax.random.normal(k_attn, (N, L, L), jnp.float32), axis=-1)

    def make_conv_params(k, d, ksize):
        kw, kb, kg, kbe, km, kv = jax.random.split(k, 6)
        bound = 1.0 / math.sqrt(d * ksize)     # PyTorch-like uniform conv init
        weight = jax.random.uniform(kw, (d, d, ksize), jnp.float32, -bound, bound)
        bias = jax.random.uniform(kb, (d,), jnp.float32, -bound, bound)
        gamma = 1.0 + 0.1 * jax.random.normal(kg, (d,), jnp.float32)
        beta = 0.1 * jax.random.normal(kbe, (d,), jnp.float32)
        mean = 0.1 * jax.random.normal(km, (d,), jnp.float32)
        var = jnp.abs(1.0 + 0.1 * jax.random.normal(kv, (d,), jnp.float32))
        return (weight, bias, gamma, beta, mean, var)

    conv1_params = make_conv_params(k1, D, K)
    conv2_params = make_conv_params(k2, D, K)

    out = residual_graph_attention(src, attn, conv1_params, conv2_params)
    out = jax.block_until_ready(out)

    ref = _reference(src, attn, conv1_params, conv2_params)
    assert out.shape == (N, D, L), out.shape
    max_err = float(jnp.max(jnp.abs(out - ref)))
    assert jnp.allclose(out, ref, atol=5e-4, rtol=5e-4), max_err

    print("KERNEL_OK")
</pallas_src>

<mosaic_0001>
module attributes {stable_mosaic.version = 11 : i64} {
  func.func @rga_kernel(%arg0: memref<2x8x16xf32, #tpu.memory_space<vmem>>, %arg1: memref<2x16x16xf32, #tpu.memory_space<vmem>>, %arg2: memref<8x24xf32, #tpu.memory_space<vmem>>, %arg3: memref<8x1xf32, #tpu.memory_space<vmem>>, %arg4: memref<8x24xf32, #tpu.memory_space<vmem>>, %arg5: memref<8x1xf32, #tpu.memory_space<vmem>>, %arg6: memref<2x8x16xf32, #tpu.memory_space<vmem>>) attributes {dimension_semantics = [], scalar_prefetch = 0 : i64, scratch_operands = 0 : i64, tpu.core_type = #tpu.core_type<tc>} {
    %c0 = arith.constant 0 : index
    %c0_0 = arith.constant 0 : index
    %c0_1 = arith.constant 0 : index
    %0 = vector.load %arg0[%c0, %c0_0, %c0_1] : memref<2x8x16xf32, #tpu.memory_space<vmem>>, vector<2x8x16xf32>
    %c0_2 = arith.constant 0 : index
    %c0_3 = arith.constant 0 : index
    %c0_4 = arith.constant 0 : index
    %1 = vector.load %arg1[%c0_2, %c0_3, %c0_4] : memref<2x16x16xf32, #tpu.memory_space<vmem>>, vector<2x16x16xf32>
    "tpu.trace_start"() <{level = 10 : i32, message = "ndl,nlm->ndm"}> : () -> ()
    %cst = arith.constant dense<0.000000e+00> : vector<2x8x16xf32>
    %2 = tpu.matmul %0, %1, %cst {dimension_numbers = #tpu.dot_dimension_numbers<[2], [1], [1], [2], [0, 0, 0, 1, 1, 2], [0], [0]>} : vector<2x8x16xf32>, vector<2x16x16xf32>, vector<2x8x16xf32> -> vector<2x8x16xf32>
    %cst_5 = arith.constant 0.000000e+00 : f32
    "tpu.trace_stop"() : () -> ()
    %3 = vector.broadcast %cst_5 : f32 to vector<2x8x1xf32>
    %4 = tpu.concatenate %3, %2, %3 in 2 : vector<2x8x1xf32>, vector<2x8x16xf32>, vector<2x8x1xf32> -> vector<2x8x18xf32>
    %5 = vector.extract_strided_slice %4 {offsets = [0, 0, 0], sizes = [2, 8, 16], strides = [1, 1, 1]} : vector<2x8x18xf32> to vector<2x8x16xf32>
    %6 = vector.extract_strided_slice %4 {offsets = [0, 0, 1], sizes = [2, 8, 16], strides = [1, 1, 1]} : vector<2x8x18xf32> to vector<2x8x16xf32>
    %7 = vector.extract_strided_slice %4 {offsets = [0, 0, 2], sizes = [2, 8, 16], strides = [1, 1, 1]} : vector<2x8x18xf32> to vector<2x8x16xf32>
    %8 = tpu.concatenate %5, %6, %7 in 1 : vector<2x8x16xf32>, vector<2x8x16xf32>, vector<2x8x16xf32> -> vector<2x24x16xf32>
    %c0_6 = arith.constant 0 : index
    %c0_7 = arith.constant 0 : index
    %9 = vector.load %arg2[%c0_6, %c0_7] : memref<8x24xf32, #tpu.memory_space<vmem>>, vector<8x24xf32>
    %10 = vector.shape_cast %9 : vector<8x24xf32> to vector<1x8x24xf32>
    %11 = vector.broadcast %10 : vector<1x8x24xf32> to vector<2x8x24xf32>
    "tpu.trace_start"() <{level = 10 : i32, message = "nok,nkl->nol"}> : () -> ()
    %cst_8 = arith.constant dense<0.000000e+00> : vector<2x8x16xf32>
    %12 = tpu.matmul %11, %8, %cst_8 {dimension_numbers = #tpu.dot_dimension_numbers<[2], [1], [1], [2], [0, 0, 0, 1, 1, 2], [0], [0]>} : vector<2x8x24xf32>, vector<2x24x16xf32>, vector<2x8x16xf32> -> vector<2x8x16xf32>
    "tpu.trace_stop"() : () -> ()
    %c0_9 = arith.constant 0 : index
    %c0_10 = arith.constant 0 : index
    %13 = vector.load %arg3[%c0_9, %c0_10] : memref<8x1xf32, #tpu.memory_space<vmem>>, vector<8x1xf32>
    %14 = vector.shape_cast %13 : vector<8x1xf32> to vector<1x8x1xf32>
    %15 = vector.broadcast %14 : vector<1x8x1xf32> to vector<2x8x16xf32>
    %16 = arith.addf %12, %15 : vector<2x8x16xf32>
    %cst_11 = arith.constant 0.000000e+00 : f32
    %17 = vector.broadcast %cst_11 : f32 to vector<2x8x16xf32>
    %18 = arith.maximumf %16, %17 : vector<2x8x16xf32>
    %cst_12 = arith.constant 0.000000e+00 : f32
    %19 = vector.broadcast %cst_12 : f32 to vector<2x8x1xf32>
    %20 = tpu.concatenate %19, %18, %19 in 2 : vector<2x8x1xf32>, vector<2x8x16xf32>, vector<2x8x1xf32> -> vector<2x8x18xf32>
    %21 = vector.extract_strided_slice %20 {offsets = [0, 0, 0], sizes = [2, 8, 16], strides = [1, 1, 1]} : vector<2x8x18xf32> to vector<2x8x16xf32>
    %22 = vector.extract_strided_slice %20 {offsets = [0, 0, 1], sizes = [2, 8, 16], strides = [1, 1, 1]} : vector<2x8x18xf32> to vector<2x8x16xf32>
    %23 = vector.extract_strided_slice %20 {offsets = [0, 0, 2], sizes = [2, 8, 16], strides = [1, 1, 1]} : vector<2x8x18xf32> to vector<2x8x16xf32>
    %24 = tpu.concatenate %21, %22, %23 in 1 : vector<2x8x16xf32>, vector<2x8x16xf32>, vector<2x8x16xf32> -> vector<2x24x16xf32>
    %c0_13 = arith.constant 0 : index
    %c0_14 = arith.constant 0 : index
    %25 = vector.load %arg4[%c0_13, %c0_14] : memref<8x24xf32, #tpu.memory_space<vmem>>, vector<8x24xf32>
    %26 = vector.shape_cast %25 : vector<8x24xf32> to vector<1x8x24xf32>
    %27 = vector.broadcast %26 : vector<1x8x24xf32> to vector<2x8x24xf32>
    "tpu.trace_start"() <{level = 10 : i32, message = "nok,nkl->nol"}> : () -> ()
    %cst_15 = arith.constant dense<0.000000e+00> : vector<2x8x16xf32>
    %28 = tpu.matmul %27, %24, %cst_15 {dimension_numbers = #tpu.dot_dimension_numbers<[2], [1], [1], [2], [0, 0, 0, 1, 1, 2], [0], [0]>} : vector<2x8x24xf32>, vector<2x24x16xf32>, vector<2x8x16xf32> -> vector<2x8x16xf32>
    "tpu.trace_stop"() : () -> ()
    %c0_16 = arith.constant 0 : index
    %c0_17 = arith.constant 0 : index
    %29 = vector.load %arg5[%c0_16, %c0_17] : memref<8x1xf32, #tpu.memory_space<vmem>>, vector<8x1xf32>
    %30 = vector.shape_cast %29 : vector<8x1xf32> to vector<1x8x1xf32>
    %31 = vector.broadcast %30 : vector<1x8x1xf32> to vector<2x8x16xf32>
    %32 = arith.addf %28, %31 : vector<2x8x16xf32>
    %cst_18 = arith.constant 0.000000e+00 : f32
    %33 = vector.broadcast %cst_18 : f32 to vector<2x8x16xf32>
    %34 = arith.maximumf %32, %33 : vector<2x8x16xf32>
    %35 = arith.addf %0, %34 : vector<2x8x16xf32>
    %cst_19 = arith.constant 0.000000e+00 : f32
    %36 = vector.broadcast %cst_19 : f32 to vector<2x8x16xf32>
    %37 = arith.maximumf %35, %36 : vector<2x8x16xf32>
    %c0_20 = arith.constant 0 : index
    %c0_21 = arith.constant 0 : index
    %c0_22 = arith.constant 0 : index
    %38 = vector.load %arg6[%c0_20, %c0_21, %c0_22] : memref<2x8x16xf32, #tpu.memory_space<vmem>>, vector<2x8x16xf32>
    tpu.vector_store %arg6[%c0_20, %c0_21, %c0_22], %37 {strides = array<i32>} : memref<2x8x16xf32, #tpu.memory_space<vmem>>, vector<2x8x16xf32>,
    return
  }
}

</mosaic_0001>

<bundles_post_ra>
// kernel: tpu_custom_call.1
= control target key start
LH: loop header
LB: loop body
LE: loop exit
PB: predicated region body
PF: predicated region fallthrough
CT: control target
= control target key end

     0   :  { %11 = vsyncpa [#allocation3], 0  ;;  %s890_s0 = inlined_call_operand.vmem [shape: f32[2,8,16], index: 0, kind: input, shape index: {}]   ;;  %s891_s1 = inlined_call_operand.hbm [shape: f32[2,16,16], index: 1, kind: input, shape index: {}]   ;;  %s892_s2 = inlined_call_operand.hbm [shape: f32[8,24], index: 2, kind: input, shape index: {}]   ;;  %s893_s3 = inlined_call_operand.vmem [shape: f32[8,1], index: 3, kind: input, shape index: {}]   ;;  %s894_s4 = inlined_call_operand.vmem [shape: f32[8,24], index: 4, kind: input, shape index: {}]   ;;  %s895_s5 = inlined_call_operand.vmem [shape: f32[8,1], index: 5, kind: input, shape index: {}]   ;;  %s896_s6 = inlined_call_operand.hbm [shape: f32[2,8,16], index: 6, kind: output, shape index: {}]  }
   0x1   :  { %12 = vsyncpa [#allocation6], 0 }
   0x2   :  { %13 = vsyncpa [#allocation4], 0  ;;  %s746_s21 = smov [#allocation2]  }
   0x3   :  { %s21_s22 = sshll.u32 %s746_s21, 4  ;;  %s22_s22 = int_to_ptr.vmem [resolvable:$true] %s21_s22 }
   0x4   :  { %s688_s23 = scalar_lea.vmem %s22_s22, 512  ;;  %p693_p1 = scmp.lt.s32.totalorder %s22_s22, %s22_s22 }
   0x5   :  { %p689_p0 = scmp.ne.s32.totalorder %s22_s22, %s688_s23  ;;  %p694_p2 = scmp.lt.s32.totalorder %s688_s23, %s688_s23 }
   0x7   :  { %p695_p3 = por %p694_p2, %p693_p1 }
   0x9   :  { %p696_p4 = pnand %p695_p3, %p689_p0 }
   0xb   :  { %699 = shalt.err (!%p696_p4)
}
   0xc   :  { %s747_s24 = smov 128   ;;  %s748_s25 = smov 8  }
   0xd   :  { %27 = dma.hbm_to_vmem [thread:$0]  %s891_s1, 512, %s22_s22, [#allocation3], %s747_s24, %s747_s24, %s748_s25  }
   0xe   :  { %s749_s28 = smov [#allocation5]  }
   0xf   :  { %s34_s29 = sshll.u32 %s749_s28, 4  ;;  %s35_s29 = int_to_ptr.vmem [resolvable:$true] %s34_s29 }
  0x10   :  { %s708_s30 = scalar_lea.vmem %s35_s29, 128  ;;  %p713_p6 = scmp.lt.s32.totalorder %s35_s29, %s35_s29 }
  0x11   :  { %p709_p5 = scmp.ne.s32.totalorder %s35_s29, %s708_s30  ;;  %p714_p7 = scmp.lt.s32.totalorder %s708_s30, %s708_s30 }
  0x13   :  { %p715_p8 = por %p714_p7, %p713_p6 }
  0x15   :  { %p716_p9 = pnand %p715_p8, %p709_p5 }
  0x17   :  { %719 = shalt.err (!%p716_p9)
}
  0x18   :  { %37 = dma.hbm_to_vmem [thread:$0]  %s892_s2, 128, %s35_s29, [#allocation6]  }
  0x19   :  { %740 = dma.done.wait [#allocation3], 512  }
  0x1a   :  { %741 = vsyncadd [#allocation3], 4294966784 }
  0x1b   :  { %742 = dma.done.wait [#allocation6], 128  }
  0x1c   :  { %743 = vsyncadd [#allocation6], 4294967168  ;;  %v750_v0 = vmov 0.0   ;;  %vm751_vm0 = vmmov 0   ;;  %v53_v1 = vld [vmem:[#allocation2 + $0x8] sm:$0xff]  ;;  %v52_v2 = vld [vmem:[#allocation2] sm:$0xff] }
  0x1d   :  { %618 = vmatprep.subr.mxu0 %v750_v0  ;;  %625 = vmatprep.subr.mxu1 %v750_v0  ;;  %v55_v3 = vld [vmem:[#allocation2 + $0x18] sm:$0xff]  ;;  %v810_v4 = vld [vmem:[%s890_s0] sm:$0xff]  ;;  %vm56_vm1 = vcmask 130048   ;;  %v54_v5 = vld [vmem:[#allocation2 + $0x10] sm:$0xff]  ;;  %vm211_vm2 = vcmask 7168   ;;  %vm214_vm3 = vcmask 138240  }
  0x1e   :  { %622 = vmatprep.mubr.msk.f32.mxu0 %vm751_vm0, %v750_v0  ;;  %629 = vmatprep.mubr.msk.f32.mxu1 %vm751_vm0, %v750_v0  ;;  %v815_v6 = vld [vmem:[%s890_s0 + $0x8] sm:$0xff]  ;;  %s752_s0 = smov 1   ;;  %v753_v14 = vmov 0   ;;  %s754_s11 = smov 127   ;;  %v232_v16 = vld [vmem:[%s893_s3] sm:$0xff]  ;;  %vm238_vm4 = vcmask 195584  }
  0x1f   :  { %619 = vmatpush3.msra.mxu0 %v53_v1  ;;  %626 = vmatpush3.msra.mxu1 %v55_v3  ;;  %s755_s12 = smov 126   ;;  %v231_v21 = vld [vmem:[#allocation5] sm:$0xff] }
  0x20   :  { %620 = vmatprep.subr.mxu0 %v750_v0  ;;  %627 = vmatprep.subr.mxu1 %v750_v0  ;;  %v411_v39 = vld [vmem:[%s895_s5] sm:$0xff] }
  0x21   :  { %621 = vmatpush3.msra.mxu0 %v52_v2  ;;  %628 = vmatpush3.msra.mxu1 %v54_v5  ;;  %v410_v42 = vld [vmem:[%s894_s4] sm:$0xff]  ;;  %s756_s4 = smov [#allocation7]  }
  0x22   :  { %623 = vmatmul.mubr.msk.f32.vlgmr.msra.gmra.mxu0 %vm56_vm1, %v810_v4  ;;  %630 = vmatmul.mubr.msk.f32.vlgmr.msra.gmra.mxu1 %vm56_vm1, %v815_v6  ;;  %s573_s5 = sshll.u32 %s756_s4, 4  ;;  %s574_s5 = int_to_ptr.vmem [resolvable:$true] %s573_s5 }
  0x23   :  { %632 = vmatprep.subr.mxu0 %v750_v0  ;;  %641 = vmatprep.subr.mxu1 %v750_v0  ;;  %s720_s18 = scalar_lea.vmem %s574_s5, 256  ;;  %p725_p11 = scmp.lt.s32.totalorder %s574_s5, %s574_s5 }
  0x24   :  { %638 = vmatprep.mubr.msk.f32.mxu0 %vm751_vm0, %v750_v0  ;;  %647 = vmatprep.mubr.msk.f32.mxu1 %vm751_vm0, %v750_v0  ;;  %p721_p10 = scmp.ne.s32.totalorder %s574_s5, %s720_s18  ;;  %p726_p12 = scmp.lt.s32.totalorder %s720_s18, %s720_s18 }
  0x25   :  { %679 = vset.pattern.permute.xlu0 %v753_v14 }
  0x26   :  { %p727_p13 = por %p726_p12, %p725_p11 }
  0x28   :  { %p728_p0 = pnand %p727_p13, %p721_p10 }
  0xe2   :  { %v126_v7 = vpop.f32.mrf.mxu0  ;;  %v199_v8 = vpop.f32.mrf.mxu1 }
  0xe3   :  { %205 = vrot.lane.b32.xlu0 %v126_v7, %s752_s0 }
  0xe4   :  { %v624_v9 = vpop.f32.mrf.mxu0  ;;  %v631_v10 = vpop.f32.mrf.mxu1 }
  0xe7   :  { %207 = vrot.lane.b32.xlu0 %v199_v8, %s752_s0 }
 0x155   :  { %v206_v11 = vpop.permute.xlu0 %205 }
 0x156   :  { %v212_v12 = vsel %vm211_vm2, 0.0, %v206_v11 }
 0x157   :  { %v215_v13 = vsel %vm214_vm3, %v212_v12, 0.0 }
 0x158   :  { %219 = vrot.lane.b32.xlu0 %v215_v13, %s754_s11  ;;  %225 = vrot.lane.b32.xlu1 %v215_v13, %s755_s12 }
 0x159   :  { %v208_v15 = vpop.permute.xlu0 %207 }
 0x15a   :  { %v213_v17 = vsel %vm211_vm2, 0.0, %v208_v15 }
 0x15b   :  { %v216_v18 = vsel %vm214_vm3, %v213_v17, 0.0 }
 0x15c   :  { %227 = vrot.lane.b32.xlu1 %v216_v18, %s755_s12  ;;  %235 = vperm.xlu0 %679, %v232_v16  }
 0x160   :  { %221 = vrot.lane.b32.xlu1 %v216_v18, %s754_s11 }
 0x1ca   :  { %v226_v19 = vpop.permute.xlu1 %225  ;;  %v220_v20 = vpop.permute.xlu0 %219 }
 0x1cb   :  { %633 = vmatpush3.msra.mxu0 %v226_v19 }
 0x1cc   :  { %634 = vmatprep.subr.mxu0 %v750_v0 }
 0x1cd   :  { %635 = vmatpush3.msra.mxu0 %v220_v20 }
 0x1ce   :  { %v228_v22 = vpop.permute.xlu1 %227  ;;  %636 = vmatprep.subr.mxu0 %v750_v0 }
 0x1cf   :  { %637 = vmatpush3.msk.msra.mxu0 %vm214_vm3, %v212_v12  ;;  %642 = vmatpush3.msra.mxu1 %v228_v22 }
 0x1d0   :  { %639 = vmatmul.mubr.msk.f32.vlgmr.msra.gmra.mxu0 %vm238_vm4, %v231_v21  ;;  %643 = vmatprep.subr.mxu1 %v750_v0 }
 0x1d1   :  { %650 = vmatprep.subr.mxu0 %v750_v0  ;;  %656 = vmatprep.mubr.msk.f32.mxu0 %vm751_vm0, %v750_v0 }
 0x1d2   :  { %v222_v23 = vpop.permute.xlu1 %221 }
 0x1d3   :  { %644 = vmatpush3.msra.mxu1 %v222_v23 }
 0x1d4   :  { %645 = vmatprep.subr.mxu1 %v750_v0 }
 0x1d5   :  { %646 = vmatpush3.msk.msra.mxu1 %vm214_vm3, %v213_v17 }
 0x1d6   :  { %648 = vmatmul.mubr.msk.f32.vlgmr.msra.gmra.mxu1 %vm238_vm4, %v231_v21  ;;  %659 = vmatprep.subr.mxu1 %v750_v0 }
 0x1d7   :  { %665 = vmatprep.mubr.msk.f32.mxu1 %vm751_vm0, %v750_v0  ;;  %v236_v24 = vpop.permute.xlu0 %235 }
 0x290   :  { %v308_v25 = vpop.f32.mrf.mxu0 }
 0x291   :  { %v309_v26 = vadd.f32 %v308_v25, %v236_v24 }
 0x292   :  { %v640_v27 = vpop.f32.mrf.mxu0 }
 0x293   :  { %v382_v28 = vmax.f32 %v309_v26, 0.0 }
 0x295   :  { %386 = vrot.lane.b32.xlu1 %v382_v28, %s752_s0 }
 0x296   :  { %v378_v29 = vpop.f32.mrf.mxu1 }
 0x297   :  { %v379_v30 = vadd.f32 %v378_v29, %v236_v24 }
 0x298   :  { %v649_v31 = vpop.f32.mrf.mxu1 }
 0x299   :  { %v383_v32 = vmax.f32 %v379_v30, 0.0 }
 0x29b   :  { %388 = vrot.lane.b32.xlu1 %v383_v32, %s752_s0 }
 0x307   :  { %v387_v33 = vpop.permute.xlu1 %386 }
 0x308   :  { %v392_v34 = vsel %vm211_vm2, 0.0, %v387_v33 }
 0x309   :  { %v394_v35 = vsel %vm214_vm3, %v392_v34, 0.0 }
 0x30a   :  { %404 = vrot.lane.b32.xlu0 %v394_v35, %s755_s12 }
 0x30d   :  { %v389_v36 = vpop.permute.xlu1 %388 }
 0x30e   :  { %v393_v37 = vsel %vm211_vm2, 0.0, %v389_v36  ;;  %398 = vrot.lane.b32.xlu0 %v394_v35, %s754_s11 }
 0x30f   :  { %v395_v38 = vsel %vm214_vm3, %v393_v37, 0.0 }
 0x310   :  { %406 = vrot.lane.b32.xlu1 %v395_v38, %s755_s12 }
 0x312   :  { %414 = vperm.xlu0 %679, %v411_v39  }
 0x314   :  { %400 = vrot.lane.b32.xlu1 %v395_v38, %s754_s11 }
 0x37c   :  { %v405_v40 = vpop.permute.xlu0 %404 }
 0x37d   :  { %651 = vmatpush3.msra.mxu0 %v405_v40 }
 0x37e   :  { %652 = vmatprep.subr.mxu0 %v750_v0 }
 0x380   :  { %v399_v41 = vpop.permute.xlu0 %398 }
 0x381   :  { %653 = vmatpush3.msra.mxu0 %v399_v41 }
 0x382   :  { %654 = vmatprep.subr.mxu0 %v750_v0  ;;  %v407_v43 = vpop.permute.xlu1 %406 }
 0x383   :  { %655 = vmatpush3.msk.msra.mxu0 %vm214_vm3, %v392_v34  ;;  %660 = vmatpush3.msra.mxu1 %v407_v43 }
 0x384   :  { %657 = vmatmul.mubr.msk.f32.vlgmr.msra.gmra.mxu0 %vm238_vm4, %v410_v42  ;;  %661 = vmatprep.subr.mxu1 %v750_v0 }
 0x386   :  { %v401_v44 = vpop.permute.xlu1 %400 }
 0x387   :  { %662 = vmatpush3.msra.mxu1 %v401_v44 }
 0x388   :  { %663 = vmatprep.subr.mxu1 %v750_v0 }
 0x389   :  { %664 = vmatpush3.msk.msra.mxu1 %vm214_vm3, %v393_v37 }
 0x38a   :  { %666 = vmatmul.mubr.msk.f32.vlgmr.msra.gmra.mxu1 %vm238_vm4, %v410_v42 }
 0x38d   :  { %v415_v45 = vpop.permute.xlu0 %414 }
 0x444   :  { %v486_v46 = vpop.f32.mrf.mxu0 }
 0x445   :  { %v487_v47 = vadd.f32 %v486_v46, %v415_v45 }
 0x446   :  { %v658_v48 = vpop.f32.mrf.mxu0 }
 0x447   :  { %v560_v49 = vmax.f32 %v487_v47, 0.0 }
 0x449   :  { %v562_v50 = vadd.f32 %v560_v49, %v810_v4 }
 0x44a   :  { %v556_v51 = vpop.f32.mrf.mxu1 }
 0x44b   :  { %v564_v52 = vmax.f32 %v562_v50, 0.0  ;;  %v557_v53 = vadd.f32 %v556_v51, %v415_v45 }
 0x44c   :  { %v667_v54 = vpop.f32.mrf.mxu1 }
 0x44d   :  { %566 = vst.msk [vmem:[#allocation7] sm:$0xff] %vm56_vm1, %v564_v52  ;;  %v561_v55 = vmax.f32 %v557_v53, 0.0 }
 0x44f   :  { %v563_v56 = vadd.f32 %v561_v55, %v815_v6 }
 0x451   :  { %v565_v57 = vmax.f32 %v563_v56, 0.0 }
 0x453   :  { %567 = vst.msk [vmem:[#allocation7 + $0x8] sm:$0xff] %vm56_vm1, %v565_v57 }
 0x454   :  { %731 = shalt.err (!%p728_p0)
}
 0x455   :  { %579 = dma.vmem_to_hbm [thread:$0]  %s574_s5, 256, %s896_s6, [#allocation4], %s747_s24, %s747_s24, %s748_s25  }
 0x456   :  { %744 = dma.done.wait [#allocation4], 256  }
 0x457   :  { %745 = vsyncadd [#allocation4], 4294967040 }
 0x458   :  { %583 = vsyncpa [#allocation3], 1 }
 0x459   :  { %584 = vsyncpa [#allocation6], 1 }
 0x45a   :  { %585 = vsyncpa [#allocation4], 1 }

</bundles_post_ra>
